<compile_context>
chip_gen: v5e
topology: v5e:2x2
jax: 0.10.0
libtpu: 0.0.40
codegen_flags: <defaults>
</compile_context>

<pallas_src>
import functools

import jax
import jax.numpy as jnp
from jax.experimental import pallas as pl
from jax.experimental.pallas import tpu as pltpu

LANE = 128                       # vreg lane width (last dim)
MAX_TM_F32 = 4096                # block rows for 32-bit inputs: (4096,128) f32 = 2 MiB
VMEM_LIMIT = 32 * 1024 * 1024    # 2 inputs x 2 buffers x 2 MiB + headroom, safe on all gens


def _num_tensorcores():
    """2 on v7x (2 TensorCores/chip), 1 on v5e/v6e. Correctness never depends on it."""
    try:
        kind = jax.devices()[0].device_kind.lower()
    except Exception:
        return 1
    return 2 if ("v7" in kind or "7x" in kind) else 1


def _rmse_kernel(p_ref, t_ref, o_ref, acc_ref, *, total_rows, tm, n_blocks, bpc):
    c = pl.program_id(0)        # core-split axis ('parallel')
    j = pl.program_id(1)        # reduction axis  ('arbitrary')

    @pl.when(j == 0)
    def _():
        acc_ref[...] = jnp.zeros_like(acc_ref)

    blk = c * bpc + j                            # logical block index (unclamped)
    blk_data = jnp.minimum(blk, n_blocks - 1)    # matches the clamped index_map
    rows_before = blk_data * tm                  # row-level: < 2**31 for any realistic n

    d = p_ref[...].astype(jnp.float32) - t_ref[...].astype(jnp.float32)
    dd = d * d

    is_full = jnp.logical_and(blk < n_blocks, rows_before + tm <= total_rows)

    # Fast path: block fully inside the valid row range (no masking, pure VPU).
    @pl.when(is_full)
    def _():
        acc_ref[...] += jnp.sum(dd.reshape(tm // 8, 8, LANE), axis=0)

    # Partial last block / clamped duplicate block: mask invalid rows before folding.
    @pl.when(jnp.logical_not(is_full))
    def _():
        row = jax.lax.broadcasted_iota(jnp.int32, (tm, LANE), 0)
        valid = jnp.logical_and(blk < n_blocks, row < total_rows - rows_before)
        masked = jnp.where(valid, dd, 0.0)
        acc_ref[...] += jnp.sum(masked.reshape(tm // 8, 8, LANE), axis=0)

    @pl.when(j == pl.num_programs(1) - 1)
    def _():
        o_ref[...] = acc_ref[...].reshape(1, 8, LANE)


def rmse(prediction, target, *, block_rows=None, cores=None):
    prediction = jnp.asarray(prediction)
    target = jnp.asarray(target)
    assert prediction.shape == target.shape
    n = int(prediction.size)
    if n == 0:
        # torch.mean of an empty tensor is nan.
        return jnp.float32(jnp.nan)

    p = prediction.reshape(-1)
    t = target.reshape(-1)

    rows = n // LANE
    rem = n - rows * LANE

    # Ragged tail (< 128 elements): tiny, summed with plain jnp in the epilog —
    # no full-array pad / copy in HBM in front of the kernel.
    tail_sum = jnp.float32(0.0)
    if rem:
        dt = p[rows * LANE:].astype(jnp.float32) - t[rows * LANE:].astype(jnp.float32)
        tail_sum = jnp.sum(dt * dt)

    if rows == 0:
        total = tail_sum
    else:
        itemsize = max(1, jnp.dtype(prediction.dtype).itemsize)
        pack = max(1, 4 // itemsize)     # sublane packing: f32 -> 1, bf16 -> 2, 8-bit -> 4
        sub = 8 * pack                   # row granularity for the block height
        max_tm = MAX_TM_F32 * pack if block_rows is None else int(block_rows)
        max_tm = max(sub, (max_tm // sub) * sub)
        tm = min(max_tm, ((rows + sub - 1) // sub) * sub)

        n_blocks = pl.cdiv(rows, tm)
        ncores = max(1, min(cores if cores is not None else _num_tensorcores(),
                            n_blocks))
        bpc = pl.cdiv(n_blocks, ncores)  # blocks per core

        if rem:
            p2 = p[: rows * LANE].reshape(rows, LANE)
            t2 = t[: rows * LANE].reshape(rows, LANE)
        else:
            p2 = p.reshape(rows, LANE)
            t2 = t.reshape(rows, LANE)

        def in_map(c, j):
            # Clamp the (at most one) duplicate trailing block per core; it is
            # masked to zero inside the kernel, so re-reading valid rows is harmless.
            return (jnp.minimum(c * bpc + j, n_blocks - 1), 0)

        partials = pl.pallas_call(
            functools.partial(_rmse_kernel, total_rows=rows, tm=tm,
                              n_blocks=n_blocks, bpc=bpc),
            out_shape=jax.ShapeDtypeStruct((ncores, 8, LANE), jnp.float32),
            grid_spec=pltpu.PrefetchScalarGridSpec(
                num_scalar_prefetch=0,
                grid=(ncores, bpc),
                in_specs=[
                    pl.BlockSpec((tm, LANE), in_map),
                    pl.BlockSpec((tm, LANE), in_map),
                ],
                out_specs=pl.BlockSpec((1, 8, LANE), lambda c, j: (c, 0, 0)),
                scratch_shapes=[pltpu.VMEM((8, LANE), jnp.float32)],
            ),
            compiler_params=pltpu.CompilerParams(
                dimension_semantics=("parallel", "arbitrary"),
                vmem_limit_bytes=VMEM_LIMIT,
            ),
            cost_estimate=pl.CostEstimate(
                flops=3 * n, transcendentals=0, bytes_accessed=2 * n * itemsize),
        )(p2, t2)

        total = jnp.sum(partials) + tail_sum

    return jnp.sqrt(total / jnp.float32(n))


if __name__ == "__main__":
    key = jax.random.PRNGKey(0)
    kp, kt = jax.random.split(key)

    # NCHW inputs, matching typical PyTorch usage of this loss.
    pred = jax.random.normal(kp, (2, 4, 16, 16), dtype=jnp.float32)
    targ = jax.random.normal(kt, (2, 4, 16, 16), dtype=jnp.float32)
    result = jax.block_until_ready(rmse(pred, targ))
    ref = jnp.sqrt(jnp.mean((pred - targ) ** 2))
    assert jnp.allclose(result, ref, rtol=1e-5, atol=1e-6), (result, ref)

    # Ragged size: exercises the in-kernel partial-row mask and the jnp tail epilog.
    kp2, kt2 = jax.random.split(jax.random.PRNGKey(1))
    pred2 = jax.random.normal(kp2, (2, 3, 5, 7), dtype=jnp.float32)
    targ2 = jax.random.normal(kt2, (2, 3, 5, 7), dtype=jnp.float32)
    result2 = jax.block_until_ready(rmse(pred2, targ2))
    ref2 = jnp.sqrt(jnp.mean((pred2 - targ2) ** 2))
    assert jnp.allclose(result2, ref2, rtol=1e-5, atol=1e-6), (result2, ref2)

    # Multi-block reduction + 2-core-split code path, forced small so it runs at
    # toy sizes (this is the same path v7x takes for real; serial loop elsewhere).
    kp3, kt3 = jax.random.split(jax.random.PRNGKey(2))
    pred3 = jax.random.normal(kp3, (4, 4, 16, 16), dtype=jnp.float32)
    targ3 = jax.random.normal(kt3, (4, 4, 16, 16), dtype=jnp.float32)
    result3 = jax.block_until_ready(rmse(pred3, targ3, block_rows=8, cores=2))
    ref3 = jnp.sqrt(jnp.mean((pred3 - targ3) ** 2))
    assert jnp.allclose(result3, ref3, rtol=1e-5, atol=1e-6), (result3, ref3)

    print("KERNEL_OK")
</pallas_src>

<mosaic_0001>
module attributes {stable_mosaic.version = 11 : i64} {
  func.func @_rmse_kernel(%arg0: i32, %arg1: i32, %arg2: memref<16x128xf32, #tpu.memory_space<vmem>>, %arg3: memref<16x128xf32, #tpu.memory_space<vmem>>, %arg4: memref<1x8x128xf32, #tpu.memory_space<vmem>>, %arg5: memref<8x128xf32, #tpu.memory_space<vmem>>) attributes {dimension_semantics = [#tpu.dimension_semantics<parallel>, #tpu.dimension_semantics<arbitrary>], iteration_bounds = array<i64: 1, 1>, scalar_prefetch = 0 : i64, scratch_operands = 1 : i64, tpu.core_type = #tpu.core_type<tc>, window_params = [{transform_indices = @transform_0, window_bounds = array<i64: 16, 128>}, {transform_indices = @transform_1, window_bounds = array<i64: 16, 128>}, {transform_indices = @transform_2, window_bounds = array<i64: 1, 8, 128>}]} {
    %c0_i32 = arith.constant 0 : i32
    %0 = arith.cmpi eq, %arg1, %c0_i32 : i32
    %1 = arith.extui %0 : i1 to i32
    %c0_i32_0 = arith.constant 0 : i32
    %2 = arith.cmpi ne, %1, %c0_i32_0 : i32
    scf.if %2 {
      %cst = arith.constant 0.000000e+00 : f32
      %23 = vector.broadcast %cst : f32 to vector<8x128xf32>
      %c0_12 = arith.constant 0 : index
      %c0_13 = arith.constant 0 : index
      %24 = vector.load %arg5[%c0_12, %c0_13] : memref<8x128xf32, #tpu.memory_space<vmem>>, vector<8x128xf32>
      tpu.vector_store %arg5[%c0_12, %c0_13], %23 {strides = array<i32>} : memref<8x128xf32, #tpu.memory_space<vmem>>, vector<8x128xf32>,
    } else {
    }
    %c1_i32 = arith.constant 1 : i32
    %3 = arith.muli %arg0, %c1_i32 : i32
    %4 = arith.addi %3, %arg1 : i32
    %c0_i32_1 = arith.constant 0 : i32
    %5 = arith.minsi %4, %c0_i32_1 : i32
    %c16_i32 = arith.constant 16 : i32
    %6 = arith.muli %5, %c16_i32 : i32
    %c0 = arith.constant 0 : index
    %c0_2 = arith.constant 0 : index
    %7 = vector.load %arg2[%c0, %c0_2] : memref<16x128xf32, #tpu.memory_space<vmem>>, vector<16x128xf32>
    %c0_3 = arith.constant 0 : index
    %c0_4 = arith.constant 0 : index
    %8 = vector.load %arg3[%c0_3, %c0_4] : memref<16x128xf32, #tpu.memory_space<vmem>>, vector<16x128xf32>
    %9 = arith.subf %7, %8 : vector<16x128xf32>
    %10 = arith.mulf %9, %9 : vector<16x128xf32>
    %c1_i32_5 = arith.constant 1 : i32
    %11 = arith.cmpi slt, %4, %c1_i32_5 : i32
    %c16_i32_6 = arith.constant 16 : i32
    %12 = arith.addi %6, %c16_i32_6 : i32
    %c16_i32_7 = arith.constant 16 : i32
    %13 = arith.cmpi sle, %12, %c16_i32_7 : i32
    %14 = arith.andi %11, %13 : i1
    %15 = arith.extui %14 : i1 to i32
    %c0_i32_8 = arith.constant 0 : i32
    %16 = arith.cmpi ne, %15, %c0_i32_8 : i32
    scf.if %16 {
      %c0_12 = arith.constant 0 : index
      %c0_13 = arith.constant 0 : index
      %23 = vector.load %arg5[%c0_12, %c0_13] : memref<8x128xf32, #tpu.memory_space<vmem>>, vector<8x128xf32>
      %24 = vector.shape_cast %10 : vector<16x128xf32> to vector<2x8x128xf32>
      %cst = arith.constant dense<0.000000e+00> : vector<8x128xf32>
      %25 = vector.multi_reduction <add>, %24, %cst [0] : vector<2x8x128xf32> to vector<8x128xf32>
      %26 = arith.addf %23, %25 : vector<8x128xf32>
      %c0_14 = arith.constant 0 : index
      %c0_15 = arith.constant 0 : index
      %27 = vector.load %arg5[%c0_14, %c0_15] : memref<8x128xf32, #tpu.memory_space<vmem>>, vector<8x128xf32>
      tpu.vector_store %arg5[%c0_14, %c0_15], %26 {strides = array<i32>} : memref<8x128xf32, #tpu.memory_space<vmem>>, vector<8x128xf32>,
    } else {
    }
    %true = arith.constant true
    %17 = arith.xori %14, %true : i1
    %18 = arith.extui %17 : i1 to i32
    %c0_i32_9 = arith.constant 0 : i32
    %19 = arith.cmpi ne, %18, %c0_i32_9 : i32
    scf.if %19 {
      %23 = tpu.iota {dimensions = array<i32: 0>} : vector<16x128xi32>
      %c1_i32_12 = arith.constant 1 : i32
      %24 = arith.cmpi slt, %4, %c1_i32_12 : i32
      %c16_i32_13 = arith.constant 16 : i32
      %25 = arith.subi %c16_i32_13, %6 : i32
      %26 = vector.broadcast %25 : i32 to vector<16x128xi32>
      %27 = arith.cmpi slt, %23, %26 : vector<16x128xi32>
      %28 = vector.broadcast %24 : i1 to vector<16x128xi1>
      %29 = arith.andi %28, %27 : vector<16x128xi1>
      %cst = arith.constant 0.000000e+00 : f32
      %30 = vector.broadcast %cst : f32 to vector<16x128xf32>
      %31 = arith.select %29, %10, %30 : vector<16x128xi1>, vector<16x128xf32>
      %c0_14 = arith.constant 0 : index
      %c0_15 = arith.constant 0 : index
      %32 = vector.load %arg5[%c0_14, %c0_15] : memref<8x128xf32, #tpu.memory_space<vmem>>, vector<8x128xf32>
      %33 = vector.shape_cast %31 : vector<16x128xf32> to vector<2x8x128xf32>
      %cst_16 = arith.constant dense<0.000000e+00> : vector<8x128xf32>
      %34 = vector.multi_reduction <add>, %33, %cst_16 [0] : vector<2x8x128xf32> to vector<8x128xf32>
      %35 = arith.addf %32, %34 : vector<8x128xf32>
      %c0_17 = arith.constant 0 : index
      %c0_18 = arith.constant 0 : index
      %36 = vector.load %arg5[%c0_17, %c0_18] : memref<8x128xf32, #tpu.memory_space<vmem>>, vector<8x128xf32>
      tpu.vector_store %arg5[%c0_17, %c0_18], %35 {strides = array<i32>} : memref<8x128xf32, #tpu.memory_space<vmem>>, vector<8x128xf32>,
    } else {
    }
    %c0_i32_10 = arith.constant 0 : i32
    %20 = arith.cmpi eq, %arg1, %c0_i32_10 : i32
    %21 = arith.extui %20 : i1 to i32
    %c0_i32_11 = arith.constant 0 : i32
    %22 = arith.cmpi ne, %21, %c0_i32_11 : i32
    scf.if %22 {
      %c0_12 = arith.constant 0 : index
      %c0_13 = arith.constant 0 : index
      %23 = vector.load %arg5[%c0_12, %c0_13] : memref<8x128xf32, #tpu.memory_space<vmem>>, vector<8x128xf32>
      %24 = vector.shape_cast %23 : vector<8x128xf32> to vector<1x8x128xf32>
      %c0_14 = arith.constant 0 : index
      %c0_15 = arith.constant 0 : index
      %c0_16 = arith.constant 0 : index
      %25 = vector.load %arg4[%c0_14, %c0_15, %c0_16] : memref<1x8x128xf32, #tpu.memory_space<vmem>>, vector<1x8x128xf32>
      tpu.vector_store %arg4[%c0_14, %c0_15, %c0_16], %24 {strides = array<i32>} : memref<1x8x128xf32, #tpu.memory_space<vmem>>, vector<1x8x128xf32>,
    } else {
    }
    return
  }
  func.func @transform_0(%arg0: i32, %arg1: i32) -> (i32, i32) {
    %c1_i32 = arith.constant 1 : i32
    %0 = arith.muli %arg0, %c1_i32 : i32
    %1 = arith.addi %0, %arg1 : i32
    %c0_i32 = arith.constant 0 : i32
    %2 = arith.minsi %1, %c0_i32 : i32
    %c0_i32_0 = arith.constant 0 : i32
    %c0_i32_1 = arith.constant 0 : i32
    return %2, %c0_i32_0 : i32, i32
  }
  func.func @transform_1(%arg0: i32, %arg1: i32) -> (i32, i32) {
    %c1_i32 = arith.constant 1 : i32
    %0 = arith.muli %arg0, %c1_i32 : i32
    %1 = arith.addi %0, %arg1 : i32
    %c0_i32 = arith.constant 0 : i32
    %2 = arith.minsi %1, %c0_i32 : i32
    %c0_i32_0 = arith.constant 0 : i32
    %c0_i32_1 = arith.constant 0 : i32
    return %2, %c0_i32_0 : i32, i32
  }
  func.func @transform_2(%arg0: i32, %arg1: i32) -> (i32, i32, i32) {
    %c0_i32 = arith.constant 0 : i32
    %c0_i32_0 = arith.constant 0 : i32
    %c0_i32_1 = arith.constant 0 : i32
    return %arg0, %c0_i32, %c0_i32_0 : i32, i32, i32
  }
}

</mosaic_0001>

<bundles_post_ra>
// kernel: tpu_custom_call.1
= control target key start
LH: loop header
LB: loop body
LE: loop exit
PB: predicated region body
PF: predicated region fallthrough
CT: control target
= control target key end

     0   :  { %7 = vsyncpa [#allocation4], 0  ;;  %s252_s0 = inlined_call_operand.hbm [shape: f32[16,128], index: 0, kind: input, shape index: {}]   ;;  %s253_s1 = inlined_call_operand.hbm [shape: f32[16,128], index: 1, kind: input, shape index: {}]   ;;  %s254_s2 = inlined_call_operand.hbm [shape: f32[1,8,128], index: 2, kind: output, shape index: {}]  }
   0x1   :  { %8 = vsyncpa [#allocation7], 0 }
   0x2   :  { %9 = vsyncpa [#allocation5], 0  ;;  %s20_s11 = sshll.u32 %s252_s0, 4  ;;  %s223_s12 = smov [#allocation3]   ;;  %s21_s11 = int_to_ptr.hbm [resolvable:$true] %s20_s11 }
   0x3   :  { %s22_s13 = sshll.u32 %s223_s12, 4  ;;  %s39_s16 = sshll.u32 %s253_s1, 4  ;;  %s23_s13 = int_to_ptr.vmem [resolvable:$true] %s22_s13  ;;  %s40_s16 = int_to_ptr.hbm [resolvable:$true] %s39_s16 }
   0x4   :  { %s224_s17 = smov 128   ;;  %s225_s18 = smov 8  }
   0x5   :  { %28 = dma.hbm_to_vmem [thread:$0]  %s21_s11, 256, %s23_s13, [#allocation4], %s224_s17, %s224_s17, %s225_s18  }
   0x6   :  { %s226_s19 = smov [#allocation6]  }
   0x7   :  { %s41_s20 = sshll.u32 %s226_s19, 4  ;;  %s42_s20 = int_to_ptr.vmem [resolvable:$true] %s41_s20 }
   0x8   :  { %47 = dma.hbm_to_vmem [thread:$0]  %s40_s16, 256, %s42_s20, [#allocation7], %s224_s17, %s224_s17, %s225_s18  }
   0x9   :  { %217 = dma.done.wait [#allocation4], 256  }
   0xa   :  { %218 = vsyncadd [#allocation4], 4294967040 }
   0xb   :  { %219 = dma.done.wait [#allocation7], 256  }
   0xc   :  { %220 = vsyncadd [#allocation7], 4294967040  ;;  %v73_v0 = vld [vmem:[#allocation3] sm:$0xff]  ;;  %v74_v1 = vld [vmem:[#allocation3 + $0x8] sm:$0xff]  ;;  %s227_s0 = smov [#allocation8]   ;;  %s125_s23 = sshll.u32 %s254_s2, 4  ;;  %s126_s23 = int_to_ptr.hbm [resolvable:$true] %s125_s23 }
   0xd   :  { %v75_v2 = vld [vmem:[#allocation6] sm:$0xff]  ;;  %v76_v3 = vld [vmem:[#allocation6 + $0x8] sm:$0xff]  ;;  %s123_s1 = sshll.u32 %s227_s0, 4  ;;  %s124_s1 = int_to_ptr.vmem [resolvable:$true] %s123_s1 }
   0xe   :  { %v77_v4 = vsub.f32 %v73_v0, %v75_v2  ;;  %v78_v5 = vsub.f32 %v74_v1, %v76_v3 }
  0x10   :  { %v79_v6 = vmul.f32 %v77_v4, %v77_v4  ;;  %v80_v7 = vmul.f32 %v78_v5, %v78_v5 }
  0x12   :  { %v89_v8 = vadd.f32 %v80_v7, %v79_v6 }
  0x14   :  { %117 = vst [vmem:[#allocation8] sm:$0xff] %v89_v8 }
  0x15   :  { %128 = dma.vmem_to_hbm [thread:$0]  %s124_s1, 128, %s126_s23, [#allocation5]  }
  0x16   :  { %221 = dma.done.wait [#allocation5], 128  }
  0x17   :  { %222 = vsyncadd [#allocation5], 4294967168 }
  0x18   :  { %133 = vsyncpa [#allocation4], 1 }
  0x19   :  { %134 = vsyncpa [#allocation7], 1 }
  0x1a   :  { %135 = vsyncpa [#allocation5], 1 }

</bundles_post_ra>
